<compile_context>
chip_gen: v5e
topology: v5e:2x2
jax: 0.10.0
libtpu: 0.0.40
codegen_flags: <defaults>
</compile_context>

<pallas_src>
import jax
import jax.numpy as jnp
from jax.experimental import pallas as pl
from jax.experimental.pallas import tpu as pltpu


def _round_up(n, m):
    return ((n + m - 1) // m) * m


def _cdiv(a, b):
    return (a + b - 1) // b


_GRIDLESS_MAX_LANES = 1024   # single-tile batches: skip grid / pipeline entirely
_MAX_B_TILE = 2048           # upper bound on the batch (lane) tile
_VMEM_LIMIT = 32 * 1024 * 1024


def mlp_kernel(xt_ref, w1t_ref, b1t_ref, w2k_ref, b2c_ref, o_ref):
    # Shapes (static at trace time):
    #   xt_ref : (in_f,  Bt)                 batch on the lane axis
    #   w1t_ref: (H_pad, in_f)
    #   b1t_ref: (H_pad, 1)
    #   w2k_ref: (H_pad, 1) if out_f == 1 else (out_f, H_pad)   [pre-transposed]
    #   b2c_ref: (out_f, 1)
    #   o_ref  : (out_f, Bt)                 lane-dense output
    in_f = xt_ref.shape[0]
    out_f = o_ref.shape[0]

    # ---- Layer 1: h[j, b] = sum_i w1[j, i] * x[i, b] + b1[j] ----
    if in_f == 1:
        # K == 1 -> VPU broadcast outer product, no MXU push/pop latency.
        h = w1t_ref[...] * xt_ref[...]                       # (H_pad, Bt)
    else:
        h = jnp.dot(w1t_ref[...], xt_ref[...],
                    preferred_element_type=jnp.float32)      # (H_pad, Bt)
    h = jnp.maximum(h + b1t_ref[...], 0.0)                   # bias bcast + ReLU (VPU)

    # ---- Layer 2: y[o, b] = sum_j w2[j, o] * h[j, b] + b2[o] ----
    if out_f == 1:
        # N == 1 -> elementwise multiply + sublane reduce (VPU + XLU), no MXU.
        y = jnp.sum(h * w2k_ref[...], axis=0, keepdims=True)  # (1, Bt)
    else:
        # Pre-transposed w2^T (out_f, H_pad): contraction on natural MXU axes,
        # no in-kernel transpose of w2 per grid step.
        y = jnp.dot(w2k_ref[...], h, preferred_element_type=jnp.float32)
    o_ref[...] = (y + b2c_ref[...]).astype(o_ref.dtype)


def mlp_regression(x, w1, b1, w2, b2):
    """Forward pass of MLPRegression.

    x : (B, in_f); w1: (in_f, H); b1: (1, H); w2: (H, out_f); b2: (1, out_f).
    Returns (B, out_f).
    """
    out_dtype = x.dtype
    f32 = jnp.float32
    # v5e guard: keep all kernel compute in f32 (no native bf16 VPU/EUP there).
    x = x.astype(f32)
    w1 = w1.astype(f32)
    b1 = b1.astype(f32)
    w2 = w2.astype(f32)
    b2 = b2.astype(f32)

    B, in_f = x.shape
    H = w1.shape[1]
    out_f = w2.shape[1]
    H_pad = _round_up(H, 8)   # f32 sublane quantum

    # Zero-padded hidden rows stay inert: relu(0*x + 0) = 0 and 0 * w2 = 0.
    w1t = jnp.pad(w1.T, ((0, H_pad - H), (0, 0)))                 # (H_pad, in_f)
    b1t = jnp.pad(b1.reshape(H, 1), ((0, H_pad - H), (0, 0)))     # (H_pad, 1)
    if out_f == 1:
        w2k = jnp.pad(w2, ((0, H_pad - H), (0, 0)))               # (H_pad, 1)
    else:
        w2k = jnp.pad(w2.T, ((0, 0), (0, H_pad - H)))             # (out_f, H_pad)
    b2c = b2.reshape(out_f, 1)                                    # (out_f, 1)

    xt = x.T                                                      # (in_f, B)

    # ---------------- Gridless fast path (single batch tile) ----------------
    if _round_up(B, 128) <= _GRIDLESS_MAX_LANES:
        yt = pl.pallas_call(
            mlp_kernel,
            out_shape=jax.ShapeDtypeStruct((out_f, B), f32),
            # Full-array VMEM blocks: exempt from the (8,128) rule, no grid,
            # no pipeline machinery, no batch padding.
            in_specs=[pl.BlockSpec(memory_space=pltpu.MemorySpace.VMEM)] * 5,
            out_specs=pl.BlockSpec(memory_space=pltpu.MemorySpace.VMEM),
            compiler_params=pltpu.CompilerParams(vmem_limit_bytes=_VMEM_LIMIT),
        )(xt, w1t, b1t, w2k, b2c)
        return yt.T.astype(out_dtype)

    # ---------------- Tiled path (large batch) ----------------
    # Adaptive tile: as large as possible (<= 2048 lanes, 128-aligned) while
    # guaranteeing >= 2 tiles so the parallel axis shards across v7x's 2 TCs.
    B_pad128 = _round_up(B, 128)
    n_tiles = max(2, _cdiv(B_pad128, _MAX_B_TILE))
    B_TILE = _round_up(_cdiv(B_pad128, n_tiles), 128)
    n_tiles = _cdiv(B_pad128, B_TILE)
    B_pad = n_tiles * B_TILE

    xt = jnp.pad(xt, ((0, 0), (0, B_pad - B)))                    # (in_f, B_pad)

    yt = pl.pallas_call(
        mlp_kernel,
        out_shape=jax.ShapeDtypeStruct((out_f, B_pad), f32),
        grid_spec=pltpu.PrefetchScalarGridSpec(
            num_scalar_prefetch=0,
            grid=(n_tiles,),
            in_specs=[
                # Activations tiled along the batch (lane) axis.
                pl.BlockSpec((in_f, B_TILE), lambda i: (0, i)),
                # Weights / biases: constant index_map -> VMEM-resident.
                pl.BlockSpec((H_pad, in_f), lambda i: (0, 0)),
                pl.BlockSpec((H_pad, 1), lambda i: (0, 0)),
                pl.BlockSpec(w2k.shape, lambda i: (0, 0)),
                pl.BlockSpec((out_f, 1), lambda i: (0, 0)),
            ],
            out_specs=pl.BlockSpec((out_f, B_TILE), lambda i: (0, i)),
        ),
        compiler_params=pltpu.CompilerParams(
            dimension_semantics=("parallel",),       # independent batch tiles
            allow_input_fusion=[True] * 5,           # fuse wrapper pad/transpose
            vmem_limit_bytes=_VMEM_LIMIT,
        ),
    )(xt, w1t, b1t, w2k, b2c)

    return yt[:, :B].T.astype(out_dtype)


def init_params(key, input_f=1, hidden_size=20, output_f=1):
    """Deterministic init mirroring nn.Linear shapes (weights stored transposed)."""
    k1, k2, k3, k4 = jax.random.split(key, 4)
    lim1 = 1.0 / jnp.sqrt(jnp.float32(input_f))
    lim2 = 1.0 / jnp.sqrt(jnp.float32(hidden_size))
    w1 = jax.random.uniform(k1, (input_f, hidden_size), jnp.float32, -lim1, lim1)
    b1 = jax.random.uniform(k2, (1, hidden_size), jnp.float32, -lim1, lim1)
    w2 = jax.random.uniform(k3, (hidden_size, output_f), jnp.float32, -lim2, lim2)
    b2 = jax.random.uniform(k4, (1, output_f), jnp.float32, -lim2, lim2)
    return w1, b1, w2, b2


if __name__ == "__main__":
    key = jax.random.PRNGKey(0)
    kx, kp, kx2 = jax.random.split(key, 3)

    batch, input_f, hidden_size, output_f = 8, 1, 20, 1
    x = jax.random.normal(kx, (batch, input_f), jnp.float32)
    w1, b1, w2, b2 = init_params(kp, input_f, hidden_size, output_f)

    def ref_fwd(xx):
        return jnp.maximum(xx @ w1 + b1, 0.0) @ w2 + b2

    # 1) Default module size -> gridless fast path.
    out = jax.block_until_ready(mlp_regression(x, w1, b1, w2, b2))
    assert out.shape == (batch, output_f)
    assert jnp.allclose(out, ref_fwd(x), atol=1e-5, rtol=1e-5)

    # 2) Larger batch -> tiled path (two 768-lane tiles; megacore-shardable on v7x).
    x_big = jax.random.normal(kx2, (1536, input_f), jnp.float32)
    out_big = jax.block_until_ready(mlp_regression(x_big, w1, b1, w2, b2))
    assert out_big.shape == (1536, output_f)
    assert jnp.allclose(out_big, ref_fwd(x_big), atol=1e-5, rtol=1e-5)

    print("KERNEL_OK")
</pallas_src>

<mosaic_0001>
module attributes {stable_mosaic.version = 11 : i64} {
  func.func @mlp_kernel(%arg0: memref<1x8xf32, #tpu.memory_space<vmem>>, %arg1: memref<24x1xf32, #tpu.memory_space<vmem>>, %arg2: memref<24x1xf32, #tpu.memory_space<vmem>>, %arg3: memref<24x1xf32, #tpu.memory_space<vmem>>, %arg4: memref<1x1xf32, #tpu.memory_space<vmem>>, %arg5: memref<1x8xf32, #tpu.memory_space<vmem>>) attributes {dimension_semantics = [], scalar_prefetch = 0 : i64, scratch_operands = 0 : i64, tpu.core_type = #tpu.core_type<tc>} {
    %c0 = arith.constant 0 : index
    %c0_0 = arith.constant 0 : index
    %0 = vector.load %arg1[%c0, %c0_0] : memref<24x1xf32, #tpu.memory_space<vmem>>, vector<24x1xf32>
    %c0_1 = arith.constant 0 : index
    %c0_2 = arith.constant 0 : index
    %1 = vector.load %arg0[%c0_1, %c0_2] : memref<1x8xf32, #tpu.memory_space<vmem>>, vector<1x8xf32>
    %2 = vector.broadcast %0 : vector<24x1xf32> to vector<24x8xf32>
    %3 = vector.broadcast %1 : vector<1x8xf32> to vector<24x8xf32>
    %4 = arith.mulf %2, %3 : vector<24x8xf32>
    %c0_3 = arith.constant 0 : index
    %c0_4 = arith.constant 0 : index
    %5 = vector.load %arg2[%c0_3, %c0_4] : memref<24x1xf32, #tpu.memory_space<vmem>>, vector<24x1xf32>
    %6 = vector.broadcast %5 : vector<24x1xf32> to vector<24x8xf32>
    %7 = arith.addf %4, %6 : vector<24x8xf32>
    %cst = arith.constant 0.000000e+00 : f32
    %8 = vector.broadcast %cst : f32 to vector<24x8xf32>
    %9 = arith.maximumf %7, %8 : vector<24x8xf32>
    %c0_5 = arith.constant 0 : index
    %c0_6 = arith.constant 0 : index
    %10 = vector.load %arg3[%c0_5, %c0_6] : memref<24x1xf32, #tpu.memory_space<vmem>>, vector<24x1xf32>
    %11 = vector.broadcast %10 : vector<24x1xf32> to vector<24x8xf32>
    %12 = arith.mulf %9, %11 : vector<24x8xf32>
    %cst_7 = arith.constant dense<0.000000e+00> : vector<8xf32>
    %13 = vector.multi_reduction <add>, %12, %cst_7 [0] : vector<24x8xf32> to vector<8xf32>
    %14 = vector.shape_cast %13 : vector<8xf32> to vector<1x8xf32>
    %c0_8 = arith.constant 0 : index
    %c0_9 = arith.constant 0 : index
    %15 = vector.load %arg4[%c0_8, %c0_9] : memref<1x1xf32, #tpu.memory_space<vmem>>, vector<1x1xf32>
    %16 = vector.broadcast %15 : vector<1x1xf32> to vector<1x8xf32>
    %17 = arith.addf %14, %16 : vector<1x8xf32>
    %c0_10 = arith.constant 0 : index
    %c0_11 = arith.constant 0 : index
    %18 = vector.load %arg5[%c0_10, %c0_11] : memref<1x8xf32, #tpu.memory_space<vmem>>, vector<1x8xf32>
    tpu.vector_store %arg5[%c0_10, %c0_11], %17 {strides = array<i32>} : memref<1x8xf32, #tpu.memory_space<vmem>>, vector<1x8xf32>,
    return
  }
}

</mosaic_0001>

<bundles_post_ra>
// kernel: tpu_custom_call.1
= control target key start
LH: loop header
LB: loop body
LE: loop exit
PB: predicated region body
PF: predicated region fallthrough
CT: control target
= control target key end

     0   :  { %s231_s0 = inlined_call_operand.vmem [shape: f32[1,8], index: 0, kind: input, shape index: {}]   ;;  %s232_s1 = inlined_call_operand.vmem [shape: f32[24,1], index: 1, kind: input, shape index: {}]   ;;  %s233_s2 = inlined_call_operand.vmem [shape: f32[24,1], index: 2, kind: input, shape index: {}]   ;;  %s234_s3 = inlined_call_operand.vmem [shape: f32[24,1], index: 3, kind: input, shape index: {}]   ;;  %s235_s4 = inlined_call_operand.<no memory space> [shape: f32[1,1], index: 4, kind: input, shape index: {}]   ;;  %s236_s5 = inlined_call_operand.hbm [shape: f32[1,8], index: 5, kind: output, shape index: {}]  }
   0x1   :  { %v10_v0 = vstv %s235_s4 }
   0x2   :  { %11 = vst [vmem:[#allocation2] sm:$0x1] %v10_v0 }
   0x3   :  { %v25_v1 = vld [vmem:[%s232_s1 + $0x10] sm:$0xff]  ;;  %v23_v2 = vld [vmem:[%s232_s1] sm:$0xff]  ;;  %v163_v3 = vmov 0   ;;  %v49_v4 = vld [vmem:[%s233_s2 + $0x8] sm:$0xff] }
   0x4   :  { %134 = vset.pattern.permute.xlu1 %v163_v3  ;;  %133 = vset.pattern.permute.xlu0 %v163_v3 }
   0x5   :  { %39 = vperm.xlu1 %134, %v25_v1   ;;  %29 = vperm.xlu0 %133, %v23_v2  }
   0x6   :  { %135 = vset.pattern.permute.xlu2 %v163_v3 }
   0x7   :  { %12 = vsyncpa [#allocation4], 0  ;;  %58 = vperm.xlu2 %135, %v49_v4   ;;  %v48_v5 = vld [vmem:[%s233_s2] sm:$0xff]  ;;  %v24_v6 = vld [vmem:[%s232_s1 + $0x8] sm:$0xff]  ;;  %vm93_vm0 = vcmask 64512   ;;  %s122_s14 = sshll.u32 %s236_s5, 4  ;;  %s123_s14 = int_to_ptr.hbm [resolvable:$true] %s122_s14 }
   0x8   :  { %v50_v7 = vld [vmem:[%s233_s2 + $0x10] sm:$0xff]  ;;  %v73_v8 = vld [vmem:[%s234_s3 + $0x8] sm:$0xff]  ;;  %v72_v9 = vld [vmem:[%s234_s3] sm:$0xff]  ;;  %vm113_vm1 = vcmask 57344  }
   0x9   :  { %v74_v10 = vld [vmem:[%s234_s3 + $0x10] sm:$0xff]  ;;  %v105_v11 = vld [vmem:[#allocation2] sm:$0x1] }
   0xa   :  { %v136_v15 = vld [vmem:[%s231_s0] ss:$0 sm:$0xff]  ;;  %s164_s0 = smov [#allocation3]  }
   0xb   :  { %s120_s3 = sshll.u32 %s164_s0, 4  ;;  %s121_s3 = int_to_ptr.vmem [resolvable:$true] %s120_s3 }
   0xd   :  { %53 = vperm.xlu1 %134, %v48_v5   ;;  %34 = vperm.xlu0 %133, %v24_v6  }
   0xf   :  { %63 = vperm.xlu2 %135, %v50_v7  }
  0x15   :  { %82 = vperm.xlu1 %134, %v73_v8   ;;  %77 = vperm.xlu0 %133, %v72_v9  }
  0x17   :  { %87 = vperm.xlu2 %135, %v74_v10  }
  0x1d   :  { %108 = vperm.xlu0 %133, %v105_v11  }
  0x61   :  { %v59_v12 = vpop.permute.xlu2 %58 }
  0x69   :  { %v64_v16 = vpop.permute.xlu2 %63 }
  0x71   :  { %v88_v26 = vpop.permute.xlu2 %87 }
  0x77   :  { %v40_v13 = vpop.permute.xlu1 %39  ;;  %v30_v14 = vpop.permute.xlu0 %29 }
  0x78   :  { %v47_v17 = vmul.f32 %v136_v15, %v40_v13  ;;  %v45_v21 = vmul.f32 %v136_v15, %v30_v14 }
  0x7a   :  { %v68_v20 = vadd.f32 %v64_v16, %v47_v17 }
  0x7c   :  { %v71_v25 = vmax.f32 %v68_v20, 0.0 }
  0x7e   :  { %v92_v31 = vmul.f32 %v88_v26, %v71_v25 }
  0x7f   :  { %v54_v18 = vpop.permute.xlu1 %53  ;;  %v35_v19 = vpop.permute.xlu0 %34 }
  0x80   :  { %v46_v22 = vmul.f32 %v136_v15, %v35_v19  ;;  %v66_v23 = vadd.f32 %v54_v18, %v45_v21  ;;  %v97_v37 = vsel %vm93_vm0, %v92_v31, 0.0 }
  0x82   :  { %v67_v24 = vadd.f32 %v59_v12, %v46_v22  ;;  %v69_v27 = vmax.f32 %v66_v23, 0.0 }
  0x84   :  { %v70_v28 = vmax.f32 %v67_v24, 0.0 }
  0x87   :  { %v83_v29 = vpop.permute.xlu1 %82  ;;  %v78_v30 = vpop.permute.xlu0 %77 }
  0x88   :  { %v91_v32 = vmul.f32 %v83_v29, %v70_v28  ;;  %v90_v33 = vmul.f32 %v78_v30, %v69_v27 }
  0x8a   :  { %v95_v34 = vsel %vm93_vm0, %v91_v32, 0.0  ;;  %v94_v35 = vsel %vm93_vm0, %v90_v33, 0.0 }
  0x8b   :  { %v96_v36 = vadd.f32 %v95_v34, %v94_v35 }
  0x8d   :  { %v98_v38 = vadd.f32 %v97_v37, %v96_v36 }
  0x8f   :  { %v99_v39 = vrot.slane %v98_v38, 4  ;;  %v109_v43 = vpop.permute.xlu0 %108 }
  0x90   :  { %v111_v46 = vperm.slane %v109_v43, 0 }
  0x91   :  { %v100_v40 = vadd.f32 %v99_v39, %v98_v38 }
  0x93   :  { %v101_v41 = vrot.slane %v100_v40, 2 }
  0x95   :  { %v102_v42 = vadd.f32 %v101_v41, %v100_v40 }
  0x97   :  { %v103_v44 = vrot.slane %v102_v42, 1 }
  0x99   :  { %v104_v45 = vadd.f32 %v103_v44, %v102_v42 }
  0x9b   :  { %v112_v47 = vadd.f32 %v111_v46, %v104_v45 }
  0x9d   :  { %114 = vst.msk [vmem:[#allocation3] sm:$0x1] %vm113_vm1, %v112_v47 }
  0x9e   :  { %125 = dma.vmem_to_hbm [thread:$0]  %s121_s3, 16, %s123_s14, [#allocation4]  }
  0x9f   :  { %161 = dma.done.wait [#allocation4], 16  }
  0xa0   :  { %162 = vsyncadd [#allocation4], 4294967280 }
  0xa1   :  { %130 = vsyncpa [#allocation4], 1 }

</bundles_post_ra>
